<compile_context>
chip_gen: v6e
topology: v6e:2x2x1
jax: 0.10.0
libtpu: 0.0.40
codegen_flags: <defaults>
</compile_context>

<pallas_src>
import functools

import jax
import jax.numpy as jnp
from jax.experimental import pallas as pl
from jax.experimental.pallas import tpu as pltpu

LANES = 128
_FOLD_FAN = 8          # independent partial accumulators inside the per-tile fold
_MIN_GRID_STEPS = 4    # keep >= ~4 grid steps when possible (>= 2 per TC on v7x)


def _default_max_tile_rows():
    """Per-generation streaming tile height (rows of 128 lanes)."""
    try:
        kind = jax.devices()[0].device_kind.lower()
    except Exception:  # defensive: fall back to the conservative size
        return 4096
    # v6e / v7x: 32 MiB default scoped VMEM (and v7x's 3.2 TB/s feed) -> bigger tiles
    # amortise the ~0.35us per-grid-step overhead.  v5e and older stay at 4096 rows.
    if "v6" in kind or "v7" in kind or "7x" in kind:
        return 8192
    return 4096


def _row_granule(*dtypes):
    """Row multiple required by the sublane packing: 8 (32-bit), 16 (16-bit), 32 (8-bit)."""
    g = 8
    for dt in dtypes:
        itemsize = jnp.dtype(dt).itemsize
        g = max(g, 8 * max(1, 4 // itemsize))
    return g


def _choose_tile_rows(rows, granule, max_tile_rows):
    cap = max(granule, (int(max_tile_rows) // granule) * granule)
    # Aim for >= _MIN_GRID_STEPS roughly equal steps so both v7x TensorCores get work.
    target = -(-rows // _MIN_GRID_STEPS)                      # ceil(rows / steps)
    target = max(granule, -(-target // granule) * granule)    # round up to granule
    return min(cap, target)


def _tversky_partials_kernel(pred_ref, targ_ref, out_ref, *,
                             tile_rows, valid_rows_last, need_mask):
    # Cast in-kernel: inputs stream in their native dtype (f32 / bf16 / int8 / bool).
    # NOTE(v7x): if the single EUP pipe ever binds at 3.2 TB/s, the sigmoid could be
    # computed via exp(-x) + pl.reciprocal(approx=True); kept plain f32 here.
    p = jax.nn.sigmoid(pred_ref[...].astype(jnp.float32))
    t = targ_ref[...].astype(jnp.float32)

    groups = tile_rows // 8  # tile_rows is always a multiple of 8 (>= granule)

    def fold(x):
        # (tile_rows, 128) -> (8, 128) partial sums.  Tile-aligned reshape + grouped
        # sublane adds only (pure VPU, no cross-lane/XLU work on the hot path).
        # Split into _FOLD_FAN independent accumulator chains (pairwise combined) so
        # the dependent-add depth never rivals the per-step DMA time on v7x.
        x = x.reshape(groups, 8, LANES)
        if groups % _FOLD_FAN == 0 and groups > _FOLD_FAN:
            chunk = groups // _FOLD_FAN
            parts = [jnp.sum(x[f * chunk:(f + 1) * chunk], axis=0)
                     for f in range(_FOLD_FAN)]
            while len(parts) > 1:  # pairwise tree combine
                parts = [parts[i] + parts[i + 1] for i in range(0, len(parts), 2)]
            return parts[0]
        return jnp.sum(x, axis=0)

    def store(pp, tt):
        out_ref[0, 0] = fold(pp * tt)   # -> TP
        out_ref[0, 1] = fold(pp)        # -> sum(p)  (FP = sum(p) - TP)
        out_ref[0, 2] = fold(tt)        # -> sum(t)  (FN = sum(t) - TP)

    if need_mask:
        # Only the final grid step can read past the real row count (Pallas pads the
        # boundary block with unspecified data) -> pay for masking only there.
        is_last = pl.program_id(0) == pl.num_programs(0) - 1

        @pl.when(jnp.logical_not(is_last))
        def _():
            store(p, t)

        @pl.when(is_last)
        def _():
            row = jax.lax.broadcasted_iota(jnp.int32, (tile_rows, 1), 0)
            valid = row < valid_rows_last    # keep the where() AFTER the sigmoid
            store(jnp.where(valid, p, 0.0), jnp.where(valid, t, 0.0))
    else:
        store(p, t)


def _tversky_partial_sums(p2, t2, max_tile_rows):
    """Streams (rows, 128) predictions / targets; returns (sum(p*t), sum(p), sum(t))."""
    rows = p2.shape[0]
    granule = _row_granule(p2.dtype, t2.dtype)
    tile_rows = _choose_tile_rows(rows, granule, max_tile_rows)
    grid = pl.cdiv(rows, tile_rows)
    need_mask = (rows % tile_rows) != 0
    valid_rows_last = rows - (grid - 1) * tile_rows

    # 2 pipeline buffers per input + a generous bound on the f32 intermediates the
    # elementwise chain materialises in VMEM.  Set explicitly so v5e's 16 MiB scoped
    # default never blocks the larger tiles, while staying under v7x's 64 MiB/TC.
    pipeline_bytes = 2 * tile_rows * LANES * (p2.dtype.itemsize + t2.dtype.itemsize)
    f32_tile_bytes = tile_rows * LANES * 4
    vmem_limit = int(min(56 << 20,
                         max(16 << 20,
                             pipeline_bytes + 8 * f32_tile_bytes + (2 << 20))))

    kernel = functools.partial(
        _tversky_partials_kernel,
        tile_rows=tile_rows,
        valid_rows_last=valid_rows_last,
        need_mask=need_mask,
    )

    partials = pl.pallas_call(
        kernel,
        out_shape=jax.ShapeDtypeStruct((grid, 3, 8, LANES), jnp.float32),
        grid_spec=pltpu.PrefetchScalarGridSpec(
            num_scalar_prefetch=0,
            grid=(grid,),
            in_specs=[
                pl.BlockSpec((tile_rows, LANES), lambda i: (i, 0)),
                pl.BlockSpec((tile_rows, LANES), lambda i: (i, 0)),
            ],
            out_specs=pl.BlockSpec((1, 3, 8, LANES), lambda i: (i, 0, 0, 0)),
        ),
        compiler_params=pltpu.CompilerParams(
            dimension_semantics=("parallel",),   # each step writes its own block; no carry
            vmem_limit_bytes=vmem_limit,
        ),
    )(p2, t2)

    sums = jnp.sum(partials, axis=(0, 2, 3))  # one XLA reduction for all three partials
    return sums[0], sums[1], sums[2]


def tversky_loss(predictions, targets, smooth=1.0, alpha=0.5, beta=0.5,
                 max_tile_rows=None):
    """Equivalent to TverskyLoss().forward(predictions, targets, smooth, alpha, beta)."""
    if max_tile_rows is None:
        max_tile_rows = _default_max_tile_rows()

    p_flat = jnp.reshape(predictions, (-1,))
    t_flat = jnp.reshape(targets, (-1,))
    n = p_flat.shape[0]

    main_rows = n // LANES
    main_n = main_rows * LANES
    tail_n = n - main_n

    tp = jnp.float32(0.0)
    sum_p = jnp.float32(0.0)
    sum_t = jnp.float32(0.0)

    if main_rows > 0:
        if tail_n == 0:
            # Free reshape (no extra HBM traffic); ragged rows are masked in-kernel.
            p2 = p_flat.reshape(main_rows, LANES)
            t2 = t_flat.reshape(main_rows, LANES)
        else:
            # TODO(synk): for n % 128 != 0 the prefix slice materialises one extra HBM
            # copy of both inputs; avoiding it needs a manual-DMA kernel over the flat
            # 1-D arrays (memory_space=pl.ANY + pl.ds chunks), not implemented here.
            p2 = p_flat[:main_n].reshape(main_rows, LANES)
            t2 = t_flat[:main_n].reshape(main_rows, LANES)
        tp_k, sp_k, st_k = _tversky_partial_sums(p2, t2, max_tile_rows)
        tp = tp + tp_k
        sum_p = sum_p + sp_k
        sum_t = sum_t + st_k

    if tail_n > 0:
        # < 128 leftover elements that do not fill a full lane row.
        p_tail = jax.nn.sigmoid(p_flat[main_n:].astype(jnp.float32))
        t_tail = t_flat[main_n:].astype(jnp.float32)
        tp = tp + jnp.sum(p_tail * t_tail)
        sum_p = sum_p + jnp.sum(p_tail)
        sum_t = sum_t + jnp.sum(t_tail)

    fp = sum_p - tp    # == sum((1 - t) * p)
    fn = sum_t - tp    # == sum(t * (1 - p))
    tversky = (tp + smooth) / (tp + alpha * fp + beta * fn + smooth)
    return 1.0 - tversky


def _reference(predictions, targets, smooth=1.0, alpha=0.5, beta=0.5):
    p = jax.nn.sigmoid(predictions.astype(jnp.float32)).reshape(-1)
    t = targets.astype(jnp.float32).reshape(-1)
    TP = jnp.sum(p * t)
    FP = jnp.sum((1.0 - t) * p)
    FN = jnp.sum(t * (1.0 - p))
    tversky = (TP + smooth) / (TP + alpha * FP + beta * FN + smooth)
    return 1.0 - tversky


if __name__ == "__main__":
    key = jax.random.PRNGKey(0)
    k1, k2, k3, k4 = jax.random.split(key, 4)

    # 1) NCHW logits + binary targets, n % 128 == 0 -> zero-copy streaming path.
    x = jax.random.normal(k1, (2, 4, 16, 16), dtype=jnp.float32)
    y = (jax.random.uniform(k2, (2, 4, 16, 16)) > 0.5).astype(jnp.float32)
    loss = tversky_loss(x, y)
    jax.block_until_ready(loss)
    ref = _reference(x, y)
    assert jnp.allclose(loss, ref, atol=1e-5, rtol=1e-5), (loss, ref)

    # 2) n % 128 == 0 but rows % tile_rows != 0 -> in-kernel last-step-only masking.
    x2 = jax.random.normal(k1, (2, 4, 16, 20), dtype=jnp.float32)   # 2560 elems = 20 rows
    y2 = (jax.random.uniform(k2, (2, 4, 16, 20)) > 0.5).astype(jnp.float32)
    loss2 = tversky_loss(x2, y2)
    jax.block_until_ready(loss2)
    ref2 = _reference(x2, y2)
    assert jnp.allclose(loss2, ref2, atol=1e-5, rtol=1e-5), (loss2, ref2)

    # 3) Fully ragged n (n % 128 != 0) -> prefix fallback + tiny pure-JAX tail.
    x3 = jax.random.normal(k3, (3, 5, 7, 11), dtype=jnp.float32)    # 1155 elements
    y3 = (jax.random.uniform(k4, (3, 5, 7, 11)) > 0.5).astype(jnp.float32)
    loss3 = tversky_loss(x3, y3)
    jax.block_until_ready(loss3)
    ref3 = _reference(x3, y3)
    assert jnp.allclose(loss3, ref3, atol=1e-5, rtol=1e-5), (loss3, ref3)

    # 4) Narrow dtypes streamed natively (bf16 logits, int8 targets), cast in-kernel —
    #    the biggest bandwidth lever from the review (row granule rounds to 32).
    x4 = jax.random.normal(k3, (2, 4, 32, 32), dtype=jnp.bfloat16)
    y4 = (jax.random.uniform(k4, (2, 4, 32, 32)) > 0.5).astype(jnp.int8)
    loss4 = tversky_loss(x4, y4)
    jax.block_until_ready(loss4)
    ref4 = _reference(x4, y4)
    assert jnp.allclose(loss4, ref4, atol=1e-4, rtol=1e-4), (loss4, ref4)

    print("KERNEL_OK")
</pallas_src>

<mosaic_0001>
module attributes {stable_mosaic.version = 11 : i64} {
  func.func @_tversky_partials_kernel(%arg0: i32, %arg1: memref<8x128xf32, #tpu.memory_space<vmem>>, %arg2: memref<8x128xf32, #tpu.memory_space<vmem>>, %arg3: memref<1x3x8x128xf32, #tpu.memory_space<vmem>>) attributes {dimension_semantics = [#tpu.dimension_semantics<parallel>], iteration_bounds = array<i64: 2>, scalar_prefetch = 0 : i64, scratch_operands = 0 : i64, tpu.core_type = #tpu.core_type<tc>, window_params = [{transform_indices = @transform_0, window_bounds = array<i64: 8, 128>}, {transform_indices = @transform_1, window_bounds = array<i64: 8, 128>}, {transform_indices = @transform_2, window_bounds = array<i64: 1, 3, 8, 128>}]} {
    %c0 = arith.constant 0 : index
    %c0_0 = arith.constant 0 : index
    %0 = vector.load %arg1[%c0, %c0_0] : memref<8x128xf32, #tpu.memory_space<vmem>>, vector<8x128xf32>
    %1 = arith.negf %0 : vector<8x128xf32>
    %2 = math.exp %1 : vector<8x128xf32>
    %cst = arith.constant 1.000000e+00 : f32
    %3 = vector.broadcast %cst : f32 to vector<8x128xf32>
    %4 = arith.addf %3, %2 : vector<8x128xf32>
    %5 = arith.divf %3, %4 : vector<8x128xf32>
    %c0_1 = arith.constant 0 : index
    %c0_2 = arith.constant 0 : index
    %6 = vector.load %arg2[%c0_1, %c0_2] : memref<8x128xf32, #tpu.memory_space<vmem>>, vector<8x128xf32>
    %7 = arith.mulf %5, %6 : vector<8x128xf32>
    %8 = vector.shape_cast %7 : vector<8x128xf32> to vector<1x8x128xf32>
    %cst_3 = arith.constant dense<0.000000e+00> : vector<8x128xf32>
    %9 = vector.multi_reduction <add>, %8, %cst_3 [0] : vector<1x8x128xf32> to vector<8x128xf32>
    %c0_4 = arith.constant 0 : index
    %c0_5 = arith.constant 0 : index
    %c0_6 = arith.constant 0 : index
    %c0_7 = arith.constant 0 : index
    %10 = vector.load %arg3[%c0_4, %c0_5, %c0_6, %c0_7] : memref<1x3x8x128xf32, #tpu.memory_space<vmem>>, vector<1x1x8x128xf32>
    %11 = vector.shape_cast %10 : vector<1x1x8x128xf32> to vector<8x128xf32>
    %12 = vector.shape_cast %9 : vector<8x128xf32> to vector<1x1x8x128xf32>
    tpu.vector_store %arg3[%c0_4, %c0_5, %c0_6, %c0_7], %12 {strides = array<i32>} : memref<1x3x8x128xf32, #tpu.memory_space<vmem>>, vector<1x1x8x128xf32>,
    %13 = vector.shape_cast %5 : vector<8x128xf32> to vector<1x8x128xf32>
    %cst_8 = arith.constant dense<0.000000e+00> : vector<8x128xf32>
    %14 = vector.multi_reduction <add>, %13, %cst_8 [0] : vector<1x8x128xf32> to vector<8x128xf32>
    %c0_9 = arith.constant 0 : index
    %c1 = arith.constant 1 : index
    %c0_10 = arith.constant 0 : index
    %c0_11 = arith.constant 0 : index
    %15 = vector.load %arg3[%c0_9, %c1, %c0_10, %c0_11] : memref<1x3x8x128xf32, #tpu.memory_space<vmem>>, vector<1x1x8x128xf32>
    %16 = vector.shape_cast %15 : vector<1x1x8x128xf32> to vector<8x128xf32>
    %17 = vector.shape_cast %14 : vector<8x128xf32> to vector<1x1x8x128xf32>
    tpu.vector_store %arg3[%c0_9, %c1, %c0_10, %c0_11], %17 {strides = array<i32>} : memref<1x3x8x128xf32, #tpu.memory_space<vmem>>, vector<1x1x8x128xf32>,
    %18 = vector.shape_cast %6 : vector<8x128xf32> to vector<1x8x128xf32>
    %cst_12 = arith.constant dense<0.000000e+00> : vector<8x128xf32>
    %19 = vector.multi_reduction <add>, %18, %cst_12 [0] : vector<1x8x128xf32> to vector<8x128xf32>
    %c0_13 = arith.constant 0 : index
    %c2 = arith.constant 2 : index
    %c0_14 = arith.constant 0 : index
    %c0_15 = arith.constant 0 : index
    %20 = vector.load %arg3[%c0_13, %c2, %c0_14, %c0_15] : memref<1x3x8x128xf32, #tpu.memory_space<vmem>>, vector<1x1x8x128xf32>
    %21 = vector.shape_cast %20 : vector<1x1x8x128xf32> to vector<8x128xf32>
    %22 = vector.shape_cast %19 : vector<8x128xf32> to vector<1x1x8x128xf32>
    tpu.vector_store %arg3[%c0_13, %c2, %c0_14, %c0_15], %22 {strides = array<i32>} : memref<1x3x8x128xf32, #tpu.memory_space<vmem>>, vector<1x1x8x128xf32>,
    return
  }
  func.func @transform_0(%arg0: i32) -> (i32, i32) {
    %c0_i32 = arith.constant 0 : i32
    %c0_i32_0 = arith.constant 0 : i32
    return %arg0, %c0_i32 : i32, i32
  }
  func.func @transform_1(%arg0: i32) -> (i32, i32) {
    %c0_i32 = arith.constant 0 : i32
    %c0_i32_0 = arith.constant 0 : i32
    return %arg0, %c0_i32 : i32, i32
  }
  func.func @transform_2(%arg0: i32) -> (i32, i32, i32, i32) {
    %c0_i32 = arith.constant 0 : i32
    %c0_i32_0 = arith.constant 0 : i32
    %c0_i32_1 = arith.constant 0 : i32
    %c0_i32_2 = arith.constant 0 : i32
    return %arg0, %c0_i32, %c0_i32_0, %c0_i32_1 : i32, i32, i32, i32
  }
}

</mosaic_0001>

<bundles_post_ra>
// kernel: tpu_custom_call.1
= control target key start
LH: loop header
LB: loop body
LE: loop exit
PB: predicated region body
PF: predicated region fallthrough
CT: control target
= control target key end

     0   :  { %7 = vsyncpa [#allocation3], 0  ;;  %s753_s0 = inlined_call_operand.hbm [shape: f32[16,128], index: 0, kind: input, shape index: {}]   ;;  %s754_s1 = inlined_call_operand.hbm [shape: f32[16,128], index: 1, kind: input, shape index: {}]   ;;  %s755_s2 = inlined_call_operand.hbm [shape: f32[2,3,8,128], index: 2, kind: output, shape index: {}]  }
   0x1   :  { %9 = vsyncpa [#allocation3 + $0x1], 0 }
   0x2   :  { %10 = vsyncpa [#allocation6], 0 }
   0x3   :  { %12 = vsyncpa [#allocation6 + $0x1], 0 }
   0x4   :  { %13 = vsyncpa [#allocation4], 0 }
   0x5   :  { %15 = vsyncpa [#allocation4 + $0x1], 0  ;;  %s544_s9 = smov 0   ;;  %s546_s10 = smov 0  }
   0x6   :  { %s548_s11 = smov 0   ;;  %s550_s12 = smov 0  }
   0x7 LB: > { %s565_s13 = sadd.s32 4294967295, %s522_s12   ;;  %s323_s14 = sadd.s32 4294967294, %s522_s12   ;;  %s522_s12 = sphi %s550_s12, %s774_s12   ;;  %s518_s11 = sphi %s548_s11, %s773_s11   ;;  %s514_s10 = sphi %s546_s10, %s772_s10   ;;  %s510_s9 = sphi %s544_s9, %s771_s9  }
   0x8   : > { %s569_s15 = sadd.s32 1, %s522_s12   ;;  %s28_s16 = sadd.s32 1, %s518_s11 }
   0x9   : > { %s25_s17 = ssub.s32 %s522_s12, %s569_s15  ;;  %p35_p0 = scmp.ne.s32.totalorder %s518_s11, %s514_s10 }
   0xa   : > { %p26_p1 = scmp.eq.s32.totalorder %s25_s17, 0  ;;  %p36_p2 = scmp.eq.s32.totalorder %s522_s12, 0 }
   0xb   : > { %p41_p3 = scmp.ne.s32.totalorder %s514_s10, %s510_s9  ;;  %p42_p4 = scmp.eq.s32.totalorder %s565_s13, 0 }
   0xc   : > { %s581_s18 = scalar_select %p26_p1, %s518_s11, %s28_s16  }
   0xd   : > { %p583_p5 = por %p36_p2, %p35_p0  ;;  %p587_p6 = por %p42_p4, %p41_p3 }
   0xe   : > { %p91_p7 = scmp.eq.s32.totalorder %s565_s13, 1  ;;  %p97_p8 = scmp.eq.s32.totalorder %s323_s14, 1 }
   0xf   : > { %s759_s20 = scalar_select %p587_p6, 1, 0 }
  0x10   : > { %p358_p10 = scmp.lt.s32.totalorder %s522_s12, 2  ;;  %p594_p11 = por %p91_p7, %p35_p0 }
  0x11   : > { %p598_p12 = por %p97_p8, %p41_p3  ;;  %s603_s23 = sand.u32 1, %s518_s11  }
  0x12   : > { %s760_s21 = scalar_select %p594_p11, 1, 0 }
  0x13   : > { %s761_s22 = scalar_select %p598_p12, 1, 0 }
  0x14   : > { %s327_s24 = sshll.u32 %s522_s12, 7  ;;  %s326_s25 = sshll.u32 %s603_s23, 3 }
  0x15   : > { %s612_s28 = scalar_lea.hbm %s753_s0, %s327_s24  ;;  %s121_s29 = scalar_lea.vmem [#allocation2], %s326_s25 }
  0x16   : > { %s128_s30 = sshll.u32 %s121_s29, 4  ;;  %p618_p13 = pnand %p358_p10, %p583_p5  ;;  %s622_s30 = int_to_ptr.vmem [resolvable:$true] %s128_s30 }
  0x17   : > { %s118_s4 = scalar_lea.sflag [#allocation3], %s603_s23  ;;  %s398_s5 = scalar_lea.hbm %s612_s28, 128 }
  0x18   : > { %p399_p2 = scmp.ne.s32.totalorder %s612_s28, %s398_s5  ;;  %p400_p3 = pneg %p618_p13 }
  0x19   : > { %s403_s8 = scalar_lea.hbm %s753_s0, 256  ;;  %p404_p5 = scmp.lt.s32.totalorder %s612_s28, %s753_s0 }
  0x1a   : > { %p401_p4 = pnand %p400_p3, %p399_p2  ;;  %p405_p8 = scmp.lt.s32.totalorder %s403_s8, %s398_s5 }
  0x1c   : > { %p402_p7 = pneg %p401_p4  ;;  %p406_p10 = por %p405_p8, %p404_p5 }
  0x1e   : > { %p407_p9 = pnand %p406_p10, %p402_p7 }
  0x20   : > { %410 = shalt.err (!%p407_p9)
}
  0x21   : > { %s411_s17 = scalar_lea.vmem %s622_s30, 128  ;;  %s524_s19 = smov [#allocation2]  }
  0x22   : > { %p412_p0 = scmp.ne.s32.totalorder %s622_s30, %s411_s17  ;;  %s416_s26 = sshll.u32 %s524_s19, 4  ;;  %s417_s26 = int_to_ptr.vmem [resolvable:$false] %s416_s26 }
  0x23   : > { %s418_s27 = scalar_lea.vmem %s417_s26, 256  ;;  %p419_p1 = scmp.lt.s32.totalorder %s622_s30, %s417_s26 }
  0x24   : > { %p414_p2 = pnand %p412_p0, %p400_p3  ;;  %p420_p12 = scmp.lt.s32.totalorder %s418_s27, %s411_s17 }
  0x26   : > { %p415_p4 = pneg %p414_p2  ;;  %p421_p11 = por %p420_p12, %p419_p1 }
  0x28   : > { %p422_p5 = pnand %p421_p11, %p415_p4 }
  0x2a   : > { %425 = shalt.err (!%p422_p5)
}
  0x2b   : > { %350 = dma.hbm_to_vmem [thread:$0]  (!%p618_p13), %s612_s28, 128, %s622_s30, %s118_s4  }
  0x2c   : > { %p763_p9 = scmp.lt.s32.totalorder %s522_s12, 3  ;;  %p764_p0 = scmp.ge.s32.totalorder %s522_s12, 1 }
  0x2d   : > { %s664_s7 = scalar_lea.hbm %s754_s1, %s327_s24  ;;  %s139_s8 = scalar_lea.vmem [#allocation5], %s326_s25 }
  0x2e   : > { %p655_p7 = pnand %p764_p0, %p763_p9  ;;  %s146_s14 = sshll.u32 %s139_s8, 4  ;;  %s147_s14 = int_to_ptr.vmem [resolvable:$true] %s146_s14 }
  0x2f   : > { %s136_s28 = scalar_lea.sflag [#allocation6], %s603_s23  ;;  %s426_s30 = scalar_lea.hbm %s664_s7, 128 }
  0x30   : > { %s765_s29 = scalar_select %p655_p7, 1, 0 }
  0x31   : > { %p427_p11 = scmp.ne.s32.totalorder %s664_s7, %s426_s30  ;;  %s431_s17 = scalar_lea.hbm %s754_s1, 256 }
  0x32   : > { %p432_p8 = scmp.lt.s32.totalorder %s664_s7, %s754_s1  ;;  %p433_p10 = scmp.lt.s32.totalorder %s431_s17, %s426_s30 }
  0x33   : > { %p429_p12 = pnand %p427_p11, %p400_p3 }
  0x34   : > { %p434_p2 = por %p433_p10, %p432_p8 }
  0x35   : > { %p430_p1 = pneg %p429_p12 }
  0x37   : > { %p435_p4 = pnand %p434_p2, %p430_p1 }
  0x39   : > { %438 = shalt.err (!%p435_p4)
}
  0x3a   : > { %s439_s25 = scalar_lea.vmem %s147_s14, 128  ;;  %s525_s23 = smov [#allocation5]  }
  0x3b   : > { %p440_p5 = scmp.ne.s32.totalorder %s147_s14, %s439_s25  ;;  %s444_s26 = sshll.u32 %s525_s23, 4  ;;  %s445_s26 = int_to_ptr.vmem [resolvable:$false] %s444_s26 }
  0x3c   : > { %s446_s27 = scalar_lea.vmem %s445_s26, 256  ;;  %p447_p11 = scmp.lt.s32.totalorder %s147_s14, %s445_s26 }
  0x3d   : > { %p442_p9 = pnand %p440_p5, %p400_p3  ;;  %p448_p12 = scmp.lt.s32.totalorder %s446_s27, %s439_s25 }
  0x3f   : > { %p443_p0 = pneg %p442_p9  ;;  %p449_p6 = por %p448_p12, %p447_p11 }
  0x41   : > { %p450_p7 = pnand %p449_p6, %p443_p0 }
  0x43   : > { %453 = shalt.err (!%p450_p7)
}
  0x44   : > { %353 = dma.hbm_to_vmem [thread:$0]  (!%p618_p13), %s664_s7, 128, %s147_s14, %s136_s28  }
  0x45   : > { %p766_p1 = scmp.ne.s32.totalorder %s765_s29, 0 }
  0x46   : > { %s690_s5 = sand.u32 (!%p766_p1), 1, %s514_s10   ;;  %p767_p3 = scmp.ne.s32.totalorder (!%p766_p1), %s759_s20, 0 }
  0x47   : > { %155 = sbr.rel (%p766_p1) target bundleno = 128 (0x80), region = 28  ;;  %s331_s6 = sshll.u32 (!%p766_p1), %s690_s5, 3 }
  0x48   : > { %s158_s8 = scalar_lea.sflag (!%p766_p1), [#allocation3], %s690_s5  ;;  %s161_s30 = scalar_lea.vmem (!%p766_p1), [#allocation2], %s331_s6 }
  0x4c   : > { %497 = dma.done.wait (%p767_p3), %s158_s8, 128  }
  0x4d   : > { %499 = vsyncadd (%p767_p3), %s158_s8, 4294967168  ;;  %s167_s3 = scalar_lea.sflag [#allocation6], %s690_s5  ;;  %s170_s7 = scalar_lea.vmem [#allocation5], %s331_s6 }
  0x4e   : > { %501 = dma.done.wait (%p767_p3), %s167_s3, 128  }
  0x4f   : > { %503 = vsyncadd (%p767_p3), %s167_s3, 4294967168  ;;  %s339_s29 = smul.u32 24, %s690_s5  ;;  %v196_v0 = vld [vmem:[%s161_s30] sm:$0xff]  ;;  %v203_v1 = vld [vmem:[%s170_s7] sm:$0xff]  ;;  %s214_s24 = scalar_lea.sflag [#allocation4], %s690_s5 }
  0x50   : > { %v333_v2 = vmul.f32 -1.442695, %v196_v0  ;;  %s340_s28 = smul.u32 384, %s565_s13  ;;  %p768_p13 = scmp.ne.s32.totalorder %s760_s21, 0 }
  0x51   : > { %s195_s14 = scalar_lea.vmem [#allocation7], %s339_s29  ;;  %s526_s13 = smov [#allocation7]  }
  0x52   : > { %335 = vst [vmem:[%s195_s14 + $0x10] sm:$0xff] %v203_v1  ;;  %394 = vpow2.f32 %v333_v2  ;;  %s227_s4 = sshll.u32 %s195_s14, 4  ;;  %s710_s17 = scalar_lea.hbm %s755_s2, %s340_s28  ;;  %s705_s4 = int_to_ptr.vmem [resolvable:$true] %s227_s4 }
  0x53   : > { %s454_s19 = scalar_lea.vmem %s705_s4, 384  ;;  %s458_s25 = sshll.u32 %s526_s13, 4  ;;  %s459_s25 = int_to_ptr.vmem [resolvable:$false] %s458_s25 }
  0x54   : > { %p455_p6 = scmp.ne.s32.totalorder %s705_s4, %s454_s19  ;;  %s460_s23 = scalar_lea.vmem %s459_s25, 768 }
  0x55   : > { %p461_p10 = scmp.lt.s32.totalorder %s705_s4, %s459_s25  ;;  %p462_p2 = scmp.lt.s32.totalorder %s460_s23, %s454_s19 }
  0x56   : > { %p456_p7 = pnand %p455_p6, %p768_p13 }
  0x57   : > { %p463_p4 = por %p462_p2, %p461_p10 }
  0x58   : > { %p457_p8 = pneg %p456_p7 }
  0x5a   : > { %p464_p5 = pnand %p463_p4, %p457_p8 }
  0x5f   : > { %v395_v3 = vpop.eup %394 }
  0x60   : > { %v200_v4 = vadd.f32 1.0, %v395_v3 }
  0x62   : > { %396 = vrcp.f32 %v200_v4 }
  0x6f   : > { %v397_v5 = vpop.eup %396 }
  0x70   : > { %v204_v6 = vmul.f32 %v397_v5, %v203_v1  ;;  %334 = vst [vmem:[%s195_s14 + $0x8] sm:$0xff] %v397_v5 }
  0x72   : > { %206 = vst [vmem:[%s195_s14] sm:$0xff] %v204_v6 }
  0x73   : > { %467 = shalt.err (!%p464_p5)
}
  0x74   : > { %s468_s26 = scalar_lea.hbm %s710_s17, 384  ;;  %s472_s8 = scalar_lea.hbm %s755_s2, 768 }
  0x75   : > { %p469_p9 = scmp.ne.s32.totalorder %s710_s17, %s468_s26  ;;  %p473_p12 = scmp.lt.s32.totalorder %s710_s17, %s755_s2 }
  0x76   : > { %p474_p1 = scmp.lt.s32.totalorder %s472_s8, %s468_s26 }
  0x77   : > { %p470_p0 = pnand %p469_p9, %p768_p13 }
  0x78   : > { %p475_p3 = por %p474_p1, %p473_p12 }
  0x79   : > { %p471_p11 = pneg %p470_p0 }
  0x7b   : > { %p476_p6 = pnand %p475_p3, %p471_p11 }
  0x7d   : > { %479 = shalt.err (!%p476_p6)
}
  0x7e   : > { %s527_s7 = smov 128   ;;  %s528_s29 = smov 8  }
  0x7f   : > { %345 = dma.vmem_to_hbm [thread:$0]  (%p768_p13), %s705_s4, 384, %s710_s17, %s214_s24, %s527_s7, %s527_s7, %s528_s29  }
  0x80 PF: > { %s242_s14 = sand.u32 1, %s510_s9   ;;  %p769_p7 = scmp.ne.s32.totalorder %s761_s22, 0 }
  0x81   : > { %p770_p8 = scmp.ge.s32.totalorder %s522_s12, 2  ;;  %s243_s28 = scalar_lea.sflag [#allocation4], %s242_s14 }
  0x83   : > { %p355_p10 = pnand %p770_p8, %p769_p7 }
  0x85   : > { %p356_p2 = pneg %p355_p10 }
  0x87   : > { %505 = dma.done.wait (%p356_p2), %s243_s28, 384  }
  0x88   : > { %507 = vsyncadd (%p356_p2), %s243_s28, 4294966912  ;;  %p18_p4 = scmp.ge.s32.totalorder %s569_s15, 4   ;;  %s771_s9 = smov %s514_s10 }
  0x89   : > { %s772_s10 = smov %s518_s11  ;;  %s773_s11 = smov %s581_s18 }
  0x8a   : > { %s774_s12 = smov %s569_s15  ;;  %20 = sbr.rel (!%p18_p4) target bundleno = 7 (0x7), region = 88 }
  0x8f   :  { %248 = vsyncpa [#allocation3], 1 }
  0x90   :  { %250 = vsyncpa [#allocation3 + $0x1], 1 }
  0x91   :  { %251 = vsyncpa [#allocation6], 1 }
  0x92   :  { %253 = vsyncpa [#allocation6 + $0x1], 1 }
  0x93   :  { %254 = vsyncpa [#allocation4], 1 }
  0x94   :  { %256 = vsyncpa [#allocation4 + $0x1], 1 }

</bundles_post_ra>
